<compile_context>
chip_gen: v6e
topology: v6e:2x2x1
jax: 0.10.0
libtpu: 0.0.40
codegen_flags: <defaults>
</compile_context>

<pallas_src>
import functools

import jax
import jax.numpy as jnp
from jax.experimental import pallas as pl
from jax.experimental.pallas import tpu as pltpu

BN_EPS = 1e-5  # PyTorch BatchNorm1d default


def _round_up(x, m):
    return (x + m - 1) // m * m


# ----------------------------------------------------------------------------
# Fused kernel factory: whole CauseSpecificNet forward in one invocation
# ----------------------------------------------------------------------------
def make_kernel(layout, hs):
    """layout: name -> (row_offset, n_rows, n_cols) into the params slab.
    All offsets are multiples of 8 rows; all column slices start at 0, so the
    ref slices below are layout-trivial views."""

    def kernel(x_ref, p_ref, o_ref):
        def blk(name):
            o, r, c = layout[name]
            return p_ref[o:o + r, :c]

        x = x_ref[...]                                                  # (TB, F_in)

        # One merged x-matmul: columns [:hs] -> shared first layer,
        # columns [hs:] -> risk first layer (biases already merged in b0x).
        xm = jnp.dot(x, blk("w0x"), preferred_element_type=jnp.float32) + blk("b0x")

        # Shared MLP (BN pre-folded into the second linear).
        h = jnp.maximum(xm[:, :hs], 0.0)
        s = jnp.dot(h, blk("wfs"), preferred_element_type=jnp.float32) + blk("bfs")

        # All risk MLPs at once; input-concat folded into the split matmul.
        z = jnp.maximum(
            xm[:, hs:] + jnp.dot(s, blk("w0rs"), preferred_element_type=jnp.float32),
            0.0)                                                        # (TB, R*H)

        # Block-diagonal second layer (BN pre-folded) -> one (TB, R*O) store.
        o_ref[...] = (jnp.dot(z, blk("wfr"), preferred_element_type=jnp.float32)
                      + blk("bfr"))

    return kernel


# ----------------------------------------------------------------------------
# Wrapper factory
# ----------------------------------------------------------------------------
def make_forward(layout, *, hs, num_risks, out_features, batch_tile=512):
    kernel = make_kernel(layout, hs)
    ro = num_risks * out_features

    # Static sizes for the cost estimate.
    n_merged = layout["w0x"][2]     # Hs + R*H
    s_dim = layout["wfs"][2]        # shared out
    rh = layout["wfr"][1]           # R*H

    @jax.jit
    def forward(x, params_slab):
        B, f_in = x.shape
        tb = min(B, batch_tile)
        grid = (pl.cdiv(B, tb),)

        flops = 2 * B * (f_in * n_merged + hs * s_dim + s_dim * rh + rh * ro)
        bytes_accessed = 4 * (B * f_in + params_slab.size + B * ro)

        out_flat = pl.pallas_call(
            kernel,
            out_shape=jax.ShapeDtypeStruct((B, ro), jnp.float32),
            grid=grid,
            in_specs=[
                pl.BlockSpec((tb, f_in), lambda i: (i, 0)),
                # Whole weight slab, constant index -> stays resident in VMEM.
                pl.BlockSpec(params_slab.shape, lambda i: (0, 0)),
            ],
            out_specs=pl.BlockSpec((tb, ro), lambda i: (i, 0)),
            compiler_params=pltpu.CompilerParams(
                dimension_semantics=("parallel",),
                vmem_limit_bytes=32 * 1024 * 1024,
            ),
            cost_estimate=pl.CostEstimate(
                flops=flops, transcendentals=0, bytes_accessed=bytes_accessed),
        )(x, params_slab)

        # Contiguous reshape (layout-trivial) == torch.stack(outs, dim=1).
        return out_flat.reshape(B, num_risks, out_features)

    return forward


# ----------------------------------------------------------------------------
# One-time parameter folding (BN -> linear, concat split, merged x-matmul,
# block-diagonal risk heads) and packing into a single VMEM slab.
# ----------------------------------------------------------------------------
def _pack_slab(named):
    """Pack 2-D param blocks into one (rows, width) slab.
    Rows of each block are padded to a multiple of 8 (sublane), the slab width
    to a multiple of 128 (lane), so in-kernel static slices never cross a
    (8, 128) tile boundary mid-block."""
    width = _round_up(max(a.shape[1] for _, a in named), 128)
    layout, off = {}, 0
    for name, a in named:
        r, c = a.shape
        layout[name] = (off, r, c)
        off += _round_up(r, 8)
    slab = jnp.zeros((_round_up(off, 8), width), jnp.float32)
    for name, a in named:
        o, r, c = layout[name]
        slab = slab.at[o:o + r, :c].set(a.astype(jnp.float32))
    return slab, layout


def fold_and_pack_params(shared_p, risk_p, in_features):
    """Fold eval-mode BatchNorm into the following Linear, merge the two
    x-matmuls, build the block-diagonal risk head, and pack everything into a
    single f32 slab + static layout."""
    # ---- shared net ----
    hs = shared_p["w0"].shape[1]
    scale_s = shared_p["gamma"] * jax.lax.rsqrt(shared_p["var"] + BN_EPS)   # (1, Hs)
    shift_s = shared_p["beta"] - shared_p["mean"] * scale_s                 # (1, Hs)
    wfs = scale_s.reshape(-1, 1) * shared_p["wf"]                           # (Hs, S)
    bfs = shift_s @ shared_p["wf"] + shared_p["bf"]                         # (1, S)

    # ---- risk nets ----
    w0 = risk_p["w0"]                          # (R, F_cat, H)
    R, F_cat, H = w0.shape
    O = risk_p["wf"].shape[2]

    # Scalability guard: block-diag packing only pays while R*H fits one MXU
    # tile on every generation; otherwise switch to a per-risk grid axis.
    assert R * H <= 128, "block-diagonal risk head needs R*H <= 128; use a per-risk grid"

    scale_r = risk_p["gamma"] * jax.lax.rsqrt(risk_p["var"] + BN_EPS)       # (R, 1, H)
    shift_r = risk_p["beta"] - risk_p["mean"] * scale_r                     # (R, 1, H)

    # First layer: concat across risks on the output dim -> (F_cat, R*H),
    # then split rows to eliminate the input concat.
    w0_all = jnp.transpose(w0, (1, 0, 2)).reshape(F_cat, R * H)
    b0_all = risk_p["b0"].reshape(1, R * H)
    w0rx = w0_all[:in_features]                                             # (F_in, R*H)
    w0rs = w0_all[in_features:]                                             # (S,    R*H)

    # Merge both x-facing first layers into one matmul: (F_in, Hs + R*H).
    w0x = jnp.concatenate([shared_p["w0"], w0rx], axis=1)
    b0x = jnp.concatenate([shared_p["b0"], b0_all], axis=1)

    # Second layer: fold BN scale, build block-diagonal (R*H, R*O) weight.
    wf_fold = scale_r.reshape(R, H, 1) * risk_p["wf"]                       # (R, H, O)
    wfr = jax.scipy.linalg.block_diag(*[wf_fold[r] for r in range(R)])      # (R*H, R*O)
    bfr = (jnp.einsum("rih,rho->rio", shift_r, risk_p["wf"])
           + risk_p["bf"]).reshape(1, R * O)                                # (1, R*O)

    slab, layout = _pack_slab([("w0x", w0x), ("b0x", b0x), ("wfs", wfs),
                               ("bfs", bfs), ("w0rs", w0rs), ("wfr", wfr),
                               ("bfr", bfr)])
    dims = dict(hs=hs, num_risks=R, out_features=O)
    return slab, layout, dims


# ----------------------------------------------------------------------------
# Deterministic parameter init (original, unfolded layout)
# ----------------------------------------------------------------------------
def _linear(key, fan_in, fan_out):
    kw, kb = jax.random.split(key)
    w = jax.random.normal(kw, (fan_in, fan_out), jnp.float32) * jnp.sqrt(2.0 / fan_in)
    b = jax.random.normal(kb, (1, fan_out), jnp.float32) * 0.05
    return w, b


def _bn(key, feat):
    k1, k2, k3, k4 = jax.random.split(key, 4)
    return dict(
        gamma=jax.random.uniform(k1, (1, feat), jnp.float32, 0.5, 1.5),
        beta=jax.random.normal(k2, (1, feat), jnp.float32) * 0.1,
        mean=jax.random.normal(k3, (1, feat), jnp.float32) * 0.1,
        var=jax.random.uniform(k4, (1, feat), jnp.float32, 0.5, 1.5),
    )


def init_params(key, in_features, hidden_shared, shared_out, hidden_indiv,
                num_risks, out_features):
    ks = jax.random.split(key, 4 + 3 * num_risks)

    w0, b0 = _linear(ks[0], in_features, hidden_shared)
    bn0 = _bn(ks[1], hidden_shared)
    wf, bf = _linear(ks[2], hidden_shared, shared_out)
    shared_p = dict(w0=w0, b0=b0, wf=wf, bf=bf, **bn0)

    f_cat = in_features + shared_out
    rw0, rb0, rwf, rbf = [], [], [], []
    rg, rbe, rmu, rva = [], [], [], []
    for r in range(num_risks):
        w0r, b0r = _linear(ks[3 + 3 * r], f_cat, hidden_indiv)
        bnr = _bn(ks[4 + 3 * r], hidden_indiv)
        wfr, bfr = _linear(ks[5 + 3 * r], hidden_indiv, out_features)
        rw0.append(w0r); rb0.append(b0r[None]); rwf.append(wfr); rbf.append(bfr[None])
        rg.append(bnr["gamma"][None]); rbe.append(bnr["beta"][None])
        rmu.append(bnr["mean"][None]); rva.append(bnr["var"][None])

    risk_p = dict(
        w0=jnp.stack(rw0),                # (R, F_cat, H)
        b0=jnp.concatenate(rb0),          # (R, 1, H)
        gamma=jnp.concatenate(rg),        # (R, 1, H)
        beta=jnp.concatenate(rbe),
        mean=jnp.concatenate(rmu),
        var=jnp.concatenate(rva),
        wf=jnp.stack(rwf),                # (R, H, O)
        bf=jnp.concatenate(rbf),          # (R, 1, O)
    )
    return shared_p, risk_p


# ----------------------------------------------------------------------------
# Pure-JAX reference on the ORIGINAL (unfolded) params
# ----------------------------------------------------------------------------
def reference_forward(x, sp, rp):
    def block(h, w, b, g, be, mu, va):
        h = jnp.maximum(h @ w + b, 0.0)
        return g * (h - mu) * jax.lax.rsqrt(va + BN_EPS) + be

    s = block(x, sp["w0"], sp["b0"], sp["gamma"], sp["beta"], sp["mean"], sp["var"])
    s = s @ sp["wf"] + sp["bf"]
    h_cat = jnp.concatenate([x, s], axis=1)
    outs = []
    for r in range(rp["w0"].shape[0]):
        z = block(h_cat, rp["w0"][r], rp["b0"][r], rp["gamma"][r], rp["beta"][r],
                  rp["mean"][r], rp["var"][r])
        outs.append(z @ rp["wf"][r] + rp["bf"][r])
    return jnp.stack(outs, axis=1)


# ----------------------------------------------------------------------------
if __name__ == "__main__":
    # Small DeepHit-style config:
    #   in_features=16, num_nodes_shared=[32, 32], num_nodes_indiv=[32],
    #   num_risks=2, out_features=8, batch_norm=True, dropout=None (eval mode)
    B, F_IN = 8, 16
    H_SHARED, S_OUT = 32, 32
    H_INDIV = 32
    NUM_RISKS = 2
    OUT_FEATURES = 8

    key = jax.random.PRNGKey(0)
    k_x, k_p = jax.random.split(key)
    x = jax.random.normal(k_x, (B, F_IN), jnp.float32)
    shared_p, risk_p = init_params(k_p, F_IN, H_SHARED, S_OUT, H_INDIV,
                                   NUM_RISKS, OUT_FEATURES)

    # One-time BN-fold / matmul merge / slab packing.
    slab, layout, dims = fold_and_pack_params(shared_p, risk_p, F_IN)
    slab = jax.block_until_ready(slab)

    forward = make_forward(layout, hs=dims["hs"], num_risks=dims["num_risks"],
                           out_features=dims["out_features"])

    out = forward(x, slab)
    out = jax.block_until_ready(out)

    assert out.shape == (B, NUM_RISKS, OUT_FEATURES), out.shape
    ref = reference_forward(x, shared_p, risk_p)
    assert jnp.allclose(out, ref, atol=1e-3, rtol=1e-3), \
        float(jnp.max(jnp.abs(out - ref)))

    print("KERNEL_OK")
</pallas_src>

<mosaic_0001>
module attributes {stable_mosaic.version = 11 : i64} {
  func.func @kernel(%arg0: i32, %arg1: memref<8x16xf32, #tpu.memory_space<vmem>>, %arg2: memref<168x128xf32, #tpu.memory_space<vmem>>, %arg3: memref<8x16xf32, #tpu.memory_space<vmem>>) attributes {dimension_semantics = [#tpu.dimension_semantics<parallel>], iteration_bounds = array<i64: 1>, scalar_prefetch = 0 : i64, scratch_operands = 0 : i64, tpu.core_type = #tpu.core_type<tc>, window_params = [{transform_indices = @transform_0, window_bounds = array<i64: 8, 16>}, {pipeline_mode = #tpu.pipeline_mode<synchronous>, transform_indices = @transform_1, window_bounds = array<i64: 168, 128>}, {transform_indices = @transform_2, window_bounds = array<i64: 8, 16>}]} {
    %c0 = arith.constant 0 : index
    %c0_0 = arith.constant 0 : index
    %0 = vector.load %arg1[%c0, %c0_0] : memref<8x16xf32, #tpu.memory_space<vmem>>, vector<8x16xf32>
    %c0_1 = arith.constant 0 : index
    %c0_2 = arith.constant 0 : index
    %1 = vector.load %arg2[%c0_1, %c0_2] : memref<168x128xf32, #tpu.memory_space<vmem>>, vector<16x96xf32>
    %cst = arith.constant dense<0.000000e+00> : vector<8x96xf32>
    %2 = tpu.matmul %0, %1, %cst {dimension_numbers = #tpu.dot_dimension_numbers<[1], [0], [0], [1], [0, 0, 1, 1], [], []>} : vector<8x16xf32>, vector<16x96xf32>, vector<8x96xf32> -> vector<8x96xf32>
    %c16 = arith.constant 16 : index
    %c0_3 = arith.constant 0 : index
    %3 = vector.load %arg2[%c16, %c0_3] : memref<168x128xf32, #tpu.memory_space<vmem>>, vector<1x96xf32>
    %4 = vector.broadcast %3 : vector<1x96xf32> to vector<8x96xf32>
    %5 = arith.addf %2, %4 : vector<8x96xf32>
    %6 = vector.extract_strided_slice %5 {offsets = [0, 0], sizes = [8, 32], strides = [1, 1]} : vector<8x96xf32> to vector<8x32xf32>
    %cst_4 = arith.constant 0.000000e+00 : f32
    %7 = vector.broadcast %cst_4 : f32 to vector<8x32xf32>
    %8 = arith.maximumf %6, %7 : vector<8x32xf32>
    %c24 = arith.constant 24 : index
    %c0_5 = arith.constant 0 : index
    %9 = vector.load %arg2[%c24, %c0_5] : memref<168x128xf32, #tpu.memory_space<vmem>>, vector<32x32xf32>
    %cst_6 = arith.constant dense<0.000000e+00> : vector<8x32xf32>
    %10 = tpu.matmul %8, %9, %cst_6 {dimension_numbers = #tpu.dot_dimension_numbers<[1], [0], [0], [1], [0, 0, 1, 1], [], []>} : vector<8x32xf32>, vector<32x32xf32>, vector<8x32xf32> -> vector<8x32xf32>
    %c56 = arith.constant 56 : index
    %c0_7 = arith.constant 0 : index
    %11 = vector.load %arg2[%c56, %c0_7] : memref<168x128xf32, #tpu.memory_space<vmem>>, vector<1x32xf32>
    %12 = vector.broadcast %11 : vector<1x32xf32> to vector<8x32xf32>
    %13 = arith.addf %10, %12 : vector<8x32xf32>
    %14 = vector.extract_strided_slice %5 {offsets = [0, 32], sizes = [8, 64], strides = [1, 1]} : vector<8x96xf32> to vector<8x64xf32>
    %c64 = arith.constant 64 : index
    %c0_8 = arith.constant 0 : index
    %15 = vector.load %arg2[%c64, %c0_8] : memref<168x128xf32, #tpu.memory_space<vmem>>, vector<32x64xf32>
    %cst_9 = arith.constant dense<0.000000e+00> : vector<8x64xf32>
    %16 = tpu.matmul %13, %15, %cst_9 {dimension_numbers = #tpu.dot_dimension_numbers<[1], [0], [0], [1], [0, 0, 1, 1], [], []>} : vector<8x32xf32>, vector<32x64xf32>, vector<8x64xf32> -> vector<8x64xf32>
    %17 = arith.addf %14, %16 : vector<8x64xf32>
    %cst_10 = arith.constant 0.000000e+00 : f32
    %18 = vector.broadcast %cst_10 : f32 to vector<8x64xf32>
    %19 = arith.maximumf %17, %18 : vector<8x64xf32>
    %c96 = arith.constant 96 : index
    %c0_11 = arith.constant 0 : index
    %20 = vector.load %arg2[%c96, %c0_11] : memref<168x128xf32, #tpu.memory_space<vmem>>, vector<64x16xf32>
    %cst_12 = arith.constant dense<0.000000e+00> : vector<8x16xf32>
    %21 = tpu.matmul %19, %20, %cst_12 {dimension_numbers = #tpu.dot_dimension_numbers<[1], [0], [0], [1], [0, 0, 1, 1], [], []>} : vector<8x64xf32>, vector<64x16xf32>, vector<8x16xf32> -> vector<8x16xf32>
    %c160 = arith.constant 160 : index
    %c0_13 = arith.constant 0 : index
    %22 = vector.load %arg2[%c160, %c0_13] : memref<168x128xf32, #tpu.memory_space<vmem>>, vector<1x16xf32>
    %23 = vector.broadcast %22 : vector<1x16xf32> to vector<8x16xf32>
    %24 = arith.addf %21, %23 : vector<8x16xf32>
    %c0_14 = arith.constant 0 : index
    %c0_15 = arith.constant 0 : index
    %25 = vector.load %arg3[%c0_14, %c0_15] : memref<8x16xf32, #tpu.memory_space<vmem>>, vector<8x16xf32>
    tpu.vector_store %arg3[%c0_14, %c0_15], %24 {strides = array<i32>} : memref<8x16xf32, #tpu.memory_space<vmem>>, vector<8x16xf32>,
    return
  }
  func.func @transform_0(%arg0: i32) -> (i32, i32) {
    %c0_i32 = arith.constant 0 : i32
    %c0_i32_0 = arith.constant 0 : i32
    return %arg0, %c0_i32 : i32, i32
  }
  func.func @transform_1(%arg0: i32) -> (i32, i32) {
    %c0_i32 = arith.constant 0 : i32
    %c0_i32_0 = arith.constant 0 : i32
    %c0_i32_1 = arith.constant 0 : i32
    return %c0_i32, %c0_i32_0 : i32, i32
  }
  func.func @transform_2(%arg0: i32) -> (i32, i32) {
    %c0_i32 = arith.constant 0 : i32
    %c0_i32_0 = arith.constant 0 : i32
    return %arg0, %c0_i32 : i32, i32
  }
}

</mosaic_0001>

<bundles_post_ra>
// kernel: forward.1
= control target key start
LH: loop header
LB: loop body
LE: loop exit
PB: predicated region body
PF: predicated region fallthrough
CT: control target
= control target key end

     0   :  { %7 = vsyncpa [#allocation3], 0  ;;  %s573_s0 = inlined_call_operand.hbm [shape: f32[8,16], index: 0, kind: input, shape index: {}]   ;;  %s574_s1 = inlined_call_operand.hbm [shape: f32[168,128], index: 1, kind: input, shape index: {}]   ;;  %s575_s2 = inlined_call_operand.vmem [shape: f32[8,16], index: 2, kind: output, shape index: {}]  }
   0x1   :  { %8 = vsyncpa [#allocation5], 0  ;;  %s511_s9 = smov [#allocation2]   ;;  %s512_s11 = smov [#allocation4]  }
   0x2   :  { %s15_s10 = sshll.u32 %s511_s9, 4  ;;  %s24_s12 = sshll.u32 %s512_s11, 4  ;;  %s16_s10 = int_to_ptr.vmem [resolvable:$true] %s15_s10  ;;  %s25_s12 = int_to_ptr.vmem [resolvable:$true] %s24_s12 }
   0x3   :  { %s475_s13 = scalar_lea.vmem %s16_s10, 128  ;;  %p480_p1 = scmp.lt.s32.totalorder %s16_s10, %s16_s10 }
   0x4   :  { %p476_p0 = scmp.ne.s32.totalorder %s16_s10, %s475_s13  ;;  %p481_p2 = scmp.lt.s32.totalorder %s475_s13, %s475_s13 }
   0x6   :  { %p482_p3 = por %p481_p2, %p480_p1 }
   0x8   :  { %p483_p4 = pnand %p482_p3, %p476_p0 }
   0xa   :  { %486 = shalt.err (!%p483_p4)
}
   0xb   :  { %18 = dma.hbm_to_vmem [thread:$0]  %s573_s0, 128, %s16_s10, [#allocation3]  }
   0xc   :  { %s495_s16 = scalar_lea.vmem %s25_s12, 2688  ;;  %p500_p6 = scmp.lt.s32.totalorder %s25_s12, %s25_s12 }
   0xd   :  { %p496_p5 = scmp.ne.s32.totalorder %s25_s12, %s495_s16  ;;  %p501_p7 = scmp.lt.s32.totalorder %s495_s16, %s495_s16 }
   0xf   :  { %p502_p8 = por %p501_p7, %p500_p6 }
  0x11   :  { %p503_p9 = pnand %p502_p8, %p496_p5 }
  0x13   :  { %506 = shalt.err (!%p503_p9)
}
  0x14   :  { %s513_s17 = smov 128   ;;  %s514_s18 = smov 8  }
  0x15   :  { %30 = dma.hbm_to_vmem [thread:$0]  %s574_s1, 2688, %s25_s12, [#allocation5], %s513_s17, %s513_s17, %s514_s18  }
  0x16   :  { %507 = dma.done.wait [#allocation3], 128  }
  0x17   :  { %508 = vsyncadd [#allocation3], 4294967168 }
  0x18   :  { %509 = dma.done.wait [#allocation5], 2688  }
  0x19   :  { %510 = vsyncadd [#allocation5], 4294964608  ;;  %v515_v0 = vmov 0.0   ;;  %vm516_vm0 = vmmov 0   ;;  %v39_v1 = vld [vmem:[#allocation4 + $0x8] sm:$0xff]  ;;  %v38_v2 = vld [vmem:[#allocation4] sm:$0xff] }
  0x1a   :  { %411 = vmatprep.subr.mxu0 %v515_v0  ;;  %415 = vmatprep.mubr.msk.f32.mxu0 %vm516_vm0, %v515_v0  ;;  %v37_v3 = vld [vmem:[#allocation2] sm:$0xff]  ;;  %vm45_vm1 = vcmask 130048   ;;  %v123_v4 = vld [vmem:[#allocation4 + $0x30] sm:$0xff]  ;;  %v122_v5 = vld [vmem:[#allocation4 + $0x28] sm:$0xff]  ;;  %vm129_vm2 = vcmask 261120   ;;  %s517_s0 = smov 32  }
  0x1b   :  { %440 = vmatprep.subr.mxu1 %v515_v0  ;;  %456 = vmatprep.mubr.msk.f32.mxu1 %vm516_vm0, %v515_v0  ;;  %v121_v6 = vld [vmem:[#allocation4 + $0x20] sm:$0xff]  ;;  %v120_v7 = vld [vmem:[#allocation4 + $0x18] sm:$0xff]  ;;  %v382_v8 = vld [vmem:[#allocation4 + $0x10] ss:$0 sm:$0xff]  ;;  %s518_s1 = smov 96   ;;  %vm302_vm3 = vcmask 523264  }
  0x1c   :  { %412 = vmatpush3.msra.mxu0 %v39_v1  ;;  %v206_v13 = vld [vmem:[#allocation4 + $0x58] sm:$0xff]  ;;  %v205_v14 = vld [vmem:[#allocation4 + $0x50] sm:$0xff]  ;;  %v204_v15 = vld [vmem:[#allocation4 + $0x48] sm:$0xff] }
  0x1d   :  { %413 = vmatprep.subr.mxu0 %v515_v0  ;;  %v203_v16 = vld [vmem:[#allocation4 + $0x40] sm:$0xff]  ;;  %v384_v17 = vld [vmem:[#allocation4 + $0x38] ss:$0 sm:$0xff]  ;;  %v292_v22 = vld [vmem:[#allocation4 + $0x90] sm:$0xff] }
  0x1e   :  { %414 = vmatpush3.msra.mxu0 %v38_v2  ;;  %v293_v21 = vld [vmem:[#allocation4 + $0x98] sm:$0xff]  ;;  %v291_v23 = vld [vmem:[#allocation4 + $0x88] sm:$0xff]  ;;  %v290_v24 = vld [vmem:[#allocation4 + $0x80] sm:$0xff] }
  0x1f   :  { %416 = vmatmul.mubr.msk.f32.vlgmr.msra.gmra.mxu0 %vm45_vm1, %v37_v3  ;;  %418 = vmatprep.subr.mxu0 %v515_v0  ;;  %v289_v25 = vld [vmem:[#allocation4 + $0x78] sm:$0xff]  ;;  %v288_v27 = vld [vmem:[#allocation4 + $0x70] sm:$0xff]  ;;  %v287_v29 = vld [vmem:[#allocation4 + $0x68] sm:$0xff] }
  0x20   :  { %419 = vmatpush3.msra.mxu0 %v123_v4  ;;  %426 = vmatprep.mubr.msk.f32.mxu0 %vm516_vm0, %v515_v0  ;;  %v286_v30 = vld [vmem:[#allocation4 + $0x60] sm:$0xff] }
  0x21   :  { %420 = vmatprep.subr.mxu0 %v515_v0  ;;  %441 = vmatpush3.msra.mxu1 %v293_v21  ;;  %v387_v35 = vld [vmem:[#allocation4 + $0xa0] ss:$0 sm:$0xff] }
  0x22   :  { %421 = vmatpush3.msra.mxu0 %v122_v5  ;;  %442 = vmatprep.subr.mxu1 %v515_v0 }
  0x23   :  { %422 = vmatprep.subr.mxu0 %v515_v0  ;;  %443 = vmatpush3.msra.mxu1 %v292_v22 }
  0x24   :  { %423 = vmatpush3.msra.mxu0 %v121_v6  ;;  %444 = vmatprep.subr.mxu1 %v515_v0 }
  0x25   :  { %424 = vmatprep.subr.mxu0 %v515_v0  ;;  %445 = vmatpush3.msra.mxu1 %v291_v23 }
  0x26   :  { %425 = vmatpush3.msra.mxu0 %v120_v7  ;;  %446 = vmatprep.subr.mxu1 %v515_v0 }
  0x27   :  { %429 = vmatprep.subr.mxu0 %v515_v0  ;;  %447 = vmatpush3.msra.mxu1 %v290_v24 }
  0x28   :  { %448 = vmatprep.subr.mxu1 %v515_v0 }
  0x29   :  { %449 = vmatpush3.msra.mxu1 %v289_v25 }
  0x2a   :  { %450 = vmatprep.subr.mxu1 %v515_v0 }
  0x2b   :  { %451 = vmatpush3.msra.mxu1 %v288_v27 }
  0x2c   :  { %452 = vmatprep.subr.mxu1 %v515_v0 }
  0x2d   :  { %453 = vmatpush3.msra.mxu1 %v287_v29 }
  0x2e   :  { %454 = vmatprep.subr.mxu1 %v515_v0 }
  0x2f   :  { %455 = vmatpush3.msra.mxu1 %v286_v30 }
  0xdf   :  { %v115_v9 = vpop.f32.mrf.mxu0 }
  0xe0   :  { %v116_v10 = vadd.f32 %v382_v8, %v115_v9 }
  0xe1   :  { %v417_v11 = vpop.f32.mrf.mxu0 }
  0xe2   :  { %v119_v12 = vmax.f32 %v116_v10, 0.0 }
  0xe4   :  { %427 = vmatmul.mubr.msk.f32.vlgmr.msra.gmra.mxu0 %vm129_vm2, %v119_v12 }
  0xe5   :  { %430 = vmatpush3.msra.mxu0 %v206_v13  ;;  %437 = vmatprep.mubr.msk.f32.mxu0 %vm516_vm0, %v515_v0 }
  0xe6   :  { %431 = vmatprep.subr.mxu0 %v515_v0 }
  0xe7   :  { %432 = vmatpush3.msra.mxu0 %v205_v14 }
  0xe8   :  { %433 = vmatprep.subr.mxu0 %v515_v0 }
  0xe9   :  { %434 = vmatpush3.msra.mxu0 %v204_v15 }
  0xea   :  { %435 = vmatprep.subr.mxu0 %v515_v0 }
  0xeb   :  { %436 = vmatpush3.msra.mxu0 %v203_v16 }
 0x1a4   :  { %v199_v18 = vpop.f32.mrf.mxu0 }
 0x1a5   :  { %v200_v19 = vadd.f32 %v384_v17, %v199_v18 }
 0x1a6   :  { %v428_v20 = vpop.f32.mrf.mxu0 }
 0x1a7   :  { %438 = vmatmul.mubr.msk.f32.vlgmr.msra.gmra.mxu0 %vm129_vm2, %v200_v19 }
 0x267   :  { %v276_v26 = vpop.f32.mrf.mxu0 }
 0x268   :  { %281 = vrot.lane.b32.xlu0 %v276_v26, %s517_s0 }
 0x269   :  { %v439_v28 = vpop.f32.mrf.mxu0 }
 0x2da   :  { %v282_v31 = vpop.permute.xlu0 %281 }
 0x2db   :  { %v284_v32 = vadd.f32 %v282_v31, %v116_v10 }
 0x2dd   :  { %v285_v33 = vmax.f32 %v284_v32, 0.0 }
 0x2df   :  { %300 = vrot.lane.b32.xlu0 %v285_v33, %s518_s1 }
 0x351   :  { %v301_v34 = vpop.permute.xlu0 %300 }
 0x352   :  { %457 = vmatmul.mubr.msk.f32.vlgmr.msra.gmra.mxu1 %vm302_vm3, %v301_v34 }
 0x412   :  { %v371_v36 = vpop.f32.mrf.mxu1 }
 0x413   :  { %v372_v37 = vadd.f32 %v387_v35, %v371_v36 }
 0x414   :  { %v458_v38 = vpop.f32.mrf.mxu1 }
 0x415   :  { %375 = vst.msk [vmem:[%s575_s2] sm:$0xff] %vm45_vm1, %v372_v37 }
 0x416   :  { %380 = vsyncpa [#allocation3], 1 }
 0x417   :  { %381 = vsyncpa [#allocation5], 1 }

</bundles_post_ra>
